<compile_context>
chip_gen: v6e
topology: v6e:2x2x1
jax: 0.10.0
libtpu: 0.0.40
codegen_flags: <defaults>
</compile_context>

<pallas_src>
import functools

import jax
import jax.numpy as jnp
from jax.experimental import pallas as pl
from jax.experimental.pallas import tpu as pltpu


# ----------------------------- config ---------------------------------------
CONFIG = dict(
    d_in=32,
    d_out=8,
    depth=3,
    variable_width=64,
    bottleneck_width=16,
    hidden_layer_activation="relu",          # activation inside each abc layer
    hidden_bottleneck_activation="relu",     # activation between layers
    bias=True,
    bias_tune=1.0,
)
CONFIG["list_a"] = [0.5] * (2 * CONFIG["depth"])
CONFIG["list_b"] = [0.5] * (2 * CONFIG["depth"])

# Matmul input dtype. Use jnp.bfloat16 on v6e/v7x for the fast MXU path
# (weights are pre-cast at fold time, accumulation stays f32); keep f32 on
# v5e or whenever the 1e-4 exactness check must hold.
COMPUTE_DTYPE = jnp.float32

TB_CAP = 2048          # max batch-tile rows (VMEM per step stays << 32 MiB)
SMALL_SINGLE_TILE = 256  # below this, a single grid step (splitting is overhead)


def _round_up(n, m):
    return ((n + m - 1) // m) * m


def _next_pow2(n):
    return 1 << max(0, (int(n) - 1)).bit_length()


def _bucket_batch(batch):
    """Bucket batch sizes so varying batches hit few compiled kernels."""
    if batch <= 8:
        return 8
    if batch <= TB_CAP:
        return max(8, _next_pow2(batch))
    return _round_up(batch, TB_CAP)


def _choose_tile(pb):
    """Pick the batch tile for a bucketed (multiple-of-8) padded batch."""
    if pb <= SMALL_SINGLE_TILE:
        return pb                      # single grid step
    if pb <= 2 * TB_CAP:
        return pb // 2                 # exactly 2 parallel steps (v7x: both TCs)
    return TB_CAP                      # >= 2 steps, cap per-step VMEM


def _activation(name):
    if name == "relu":
        return lambda x: jnp.maximum(x, 0.0)
    if name == "identity":
        return lambda x: x
    if name == "tanh":
        return jnp.tanh
    # TODO(synk): 'custom' callback activations (hidden_layer_activation_callback)
    # are Python callables in the torch module; plug a jnp-compatible callable
    # here if needed.
    raise ValueError(f"unsupported activation: {name}")


# ----------------------------- pallas kernel --------------------------------
def _stack_kernel(x_ref, w1_ref, b1_ref, w2_ref, b2_ref, o_ref, *,
                  depth, d_in, d_out, out_pad, hidden_act, bottleneck_act,
                  compute_dtype):
    """Fused forward of the whole abc stack for one batch tile.

    Packed, pre-folded parameters (all VMEM-resident across batch tiles):
      w1_ref : (depth, K_PAD, vw)     rows beyond each layer's w_in are zero
      b1_ref : (depth, 1, vw)         bias_tune already folded in
      w2_ref : (depth, vw, OUT_PAD)   cols beyond each layer's w_out are zero
      b2_ref : (depth, 1, OUT_PAD)
    """
    x = x_ref[...]                                       # (TB, d_in) f32
    for i in range(depth):
        k = d_in if i == 0 else out_pad                  # static per layer
        a1 = w1_ref[i, :k, :]                            # (k, vw) compute dtype
        h = jnp.dot(x.astype(compute_dtype), a1,
                    preferred_element_type=jnp.float32)  # MXU, f32 accumulate
        h = hidden_act(h + b1_ref[i])                    # f32 VPU
        a2 = w2_ref[i]                                   # (vw, OUT_PAD)
        x = jnp.dot(h.astype(compute_dtype), a2,
                    preferred_element_type=jnp.float32)
        x = x + b2_ref[i]
        if i != depth - 1:
            x = bottleneck_act(x)                        # inter-layer activation
    # Narrow, exact output store: only d_out lanes, contiguous rows in HBM.
    o_ref[...] = x[:, :d_out].astype(o_ref.dtype)


def make_forward(cfg):
    """Build a forward: pad/bucket outside jit, one pallas_call inside."""
    hidden_act = _activation(cfg["hidden_layer_activation"])
    bottleneck_act = _activation(cfg["hidden_bottleneck_activation"])
    depth = cfg["depth"]
    d_in = cfg["d_in"]
    d_out = cfg["d_out"]

    @jax.jit
    def _forward_padded(folded, x_padded):
        w1, b1, w2, b2 = folded
        pb = x_padded.shape[0]                 # bucketed, multiple of 8
        out_pad = w2.shape[-1]
        tb = _choose_tile(pb)
        assert pb % tb == 0
        grid = (pb // tb,)

        kernel = functools.partial(
            _stack_kernel,
            depth=depth, d_in=d_in, d_out=d_out, out_pad=out_pad,
            hidden_act=hidden_act, bottleneck_act=bottleneck_act,
            compute_dtype=COMPUTE_DTYPE,
        )
        in_specs = [
            pl.BlockSpec((tb, d_in), lambda i: (i, 0)),
            # Packed parameters: constant block index => fetched once,
            # VMEM-resident across all batch tiles.
            pl.BlockSpec(w1.shape, lambda i: (0, 0, 0)),
            pl.BlockSpec(b1.shape, lambda i: (0, 0, 0)),
            pl.BlockSpec(w2.shape, lambda i: (0, 0, 0)),
            pl.BlockSpec(b2.shape, lambda i: (0, 0, 0)),
        ]
        return pl.pallas_call(
            kernel,
            out_shape=jax.ShapeDtypeStruct((pb, d_out), jnp.float32),
            grid=grid,
            in_specs=in_specs,
            out_specs=pl.BlockSpec((tb, d_out), lambda i: (i, 0)),
            compiler_params=pltpu.CompilerParams(
                dimension_semantics=("parallel",)),
        )(x_padded, w1, b1, w2, b2)

    def forward(folded, x):
        batch = x.shape[0]
        pb = _bucket_batch(batch)
        if pb != batch:
            x = jnp.pad(x, ((0, pb - batch), (0, 0)))
        out = _forward_padded(folded, x)
        return out[:batch] if pb != batch else out

    return forward


# ----------------------------- params ---------------------------------------
def init_params(key, cfg):
    """Deterministic Gaussian init matching abc_CoreStack.initialize_parameters."""
    depth = cfg["depth"]
    d_in, d_out = cfg["d_in"], cfg["d_out"]
    vw, bw = cfg["variable_width"], cfg["bottleneck_width"]
    params = []
    for i in range(depth):
        if depth == 1:
            w_in, w_out = d_in, d_out
        elif i == 0:
            w_in, w_out = d_in, bw
        elif i < depth - 1:
            w_in, w_out = bw, bw
        else:
            w_in, w_out = bw, d_out
        b0, b1 = cfg["list_b"][2 * i], cfg["list_b"][2 * i + 1]
        key, k1, k2, k3, k4 = jax.random.split(key, 5)
        A1 = jax.random.normal(k1, (w_in, vw), jnp.float32) * (w_in ** (-b0))
        A2 = jax.random.normal(k2, (vw, w_out), jnp.float32) * (vw ** (-b1))
        if cfg["bias"]:
            bias1 = jax.random.normal(k3, (vw,), jnp.float32)
            bias2 = jax.random.normal(k4, (w_out,), jnp.float32)
        else:
            bias1 = jnp.zeros((vw,), jnp.float32)
            bias2 = jnp.zeros((w_out,), jnp.float32)
        params.append(dict(A1=A1, b1=bias1, A2=A2, b2=bias2,
                           w_in=w_in, w_out=w_out, w_var=vw))
    return params


def fold_params(params, cfg):
    """One-time fold of abc scales / bias_tune into the weights, packed into
    four stacked buffers (zero-padded to common per-layer shapes):
        W1: (depth, K_PAD, vw)   B1: (depth, 1, vw)
        W2: (depth, vw, OUT_PAD) B2: (depth, 1, OUT_PAD)
    Zero padding is exact: padded A1 rows multiply padded (zero) x columns and
    padded A2 columns / b2 lanes produce zeros that are sliced off in-kernel.
    """
    depth = cfg["depth"]
    vw = cfg["variable_width"]
    bias_tune = float(cfg["bias_tune"])
    in_ws = [p["w_in"] for p in params]
    out_ws = [p["w_out"] for p in params]
    k_pad = _round_up(max(max(in_ws), max(out_ws)), 8)
    out_pad = _round_up(max(out_ws), 8)

    W1 = jnp.zeros((depth, k_pad, vw), jnp.float32)
    B1 = jnp.zeros((depth, 1, vw), jnp.float32)
    W2 = jnp.zeros((depth, vw, out_pad), jnp.float32)
    B2 = jnp.zeros((depth, 1, out_pad), jnp.float32)
    for i, p in enumerate(params):
        a0, a1 = cfg["list_a"][2 * i], cfg["list_a"][2 * i + 1]
        s1 = float(p["w_in"] ** (-a0))
        s2 = float(p["w_var"] ** (-a1))
        W1 = W1.at[i, :p["w_in"], :].set(p["A1"] * s1)
        W2 = W2.at[i, :, :p["w_out"]].set(p["A2"] * s2)
        B1 = B1.at[i, 0, :].set(p["b1"] * bias_tune)
        B2 = B2.at[i, 0, :p["w_out"]].set(p["b2"] * bias_tune)
    # Pre-cast weights once (bf16 path on v6e/v7x); biases stay f32 for the
    # f32 bias-add / activation path (v5e has no bf16 VPU/EUP).
    W1 = W1.astype(COMPUTE_DTYPE)
    W2 = W2.astype(COMPUTE_DTYPE)
    return (W1, B1, W2, B2)


# ----------------------------- reference ------------------------------------
def nn_model_reference(params, x, cfg):
    """Pure-JAX reference (unfolded math, matches the torch module)."""
    act_h = _activation(cfg["hidden_layer_activation"])
    act_b = _activation(cfg["hidden_bottleneck_activation"])
    depth = cfg["depth"]
    for i, p in enumerate(params):
        a0, a1 = cfg["list_a"][2 * i], cfg["list_a"][2 * i + 1]
        h = x @ p["A1"] * (p["w_in"] ** (-a0)) + p["b1"] * cfg["bias_tune"]
        h = act_h(h)
        x = h @ p["A2"] * (p["w_var"] ** (-a1)) + p["b2"] * cfg["bias_tune"]
        if i != depth - 1:
            x = act_b(x)
    return x


# ----------------------------- main ------------------------------------------
if __name__ == "__main__":
    key = jax.random.PRNGKey(0)
    key, kx = jax.random.split(key)
    batch = 4
    x = jax.random.normal(kx, (batch, CONFIG["d_in"]), jnp.float32)

    params = init_params(key, CONFIG)
    folded = fold_params(params, CONFIG)
    forward = make_forward(CONFIG)

    out = forward(folded, x)
    out = jax.block_until_ready(out)

    ref = nn_model_reference(params, x, CONFIG)
    assert out.shape == (batch, CONFIG["d_out"]), out.shape

    tol = 1e-4 if COMPUTE_DTYPE == jnp.float32 else 3e-2
    assert jnp.allclose(out, ref, atol=tol, rtol=tol), \
        float(jnp.max(jnp.abs(out - ref)))

    print("KERNEL_OK")
</pallas_src>

<mosaic_0001>
module attributes {stable_mosaic.version = 11 : i64} {
  func.func @_stack_kernel(%arg0: i32, %arg1: memref<8x32xf32, #tpu.memory_space<vmem>>, %arg2: memref<3x32x64xf32, #tpu.memory_space<vmem>>, %arg3: memref<3x1x64xf32, #tpu.memory_space<vmem>>, %arg4: memref<3x64x16xf32, #tpu.memory_space<vmem>>, %arg5: memref<3x1x16xf32, #tpu.memory_space<vmem>>, %arg6: memref<8x8xf32, #tpu.memory_space<vmem>>) attributes {dimension_semantics = [#tpu.dimension_semantics<parallel>], iteration_bounds = array<i64: 1>, scalar_prefetch = 0 : i64, scratch_operands = 0 : i64, tpu.core_type = #tpu.core_type<tc>, window_params = [{transform_indices = @transform_0, window_bounds = array<i64: 8, 32>}, {pipeline_mode = #tpu.pipeline_mode<synchronous>, transform_indices = @transform_1, window_bounds = array<i64: 3, 32, 64>}, {pipeline_mode = #tpu.pipeline_mode<synchronous>, transform_indices = @transform_2, window_bounds = array<i64: 3, 1, 64>}, {pipeline_mode = #tpu.pipeline_mode<synchronous>, transform_indices = @transform_3, window_bounds = array<i64: 3, 64, 16>}, {pipeline_mode = #tpu.pipeline_mode<synchronous>, transform_indices = @transform_4, window_bounds = array<i64: 3, 1, 16>}, {transform_indices = @transform_5, window_bounds = array<i64: 8, 8>}]} {
    %c0 = arith.constant 0 : index
    %c0_0 = arith.constant 0 : index
    %0 = vector.load %arg1[%c0, %c0_0] : memref<8x32xf32, #tpu.memory_space<vmem>>, vector<8x32xf32>
    %c0_1 = arith.constant 0 : index
    %c0_2 = arith.constant 0 : index
    %c0_3 = arith.constant 0 : index
    %1 = vector.load %arg2[%c0_1, %c0_2, %c0_3] : memref<3x32x64xf32, #tpu.memory_space<vmem>>, vector<1x32x64xf32>
    %2 = vector.shape_cast %1 : vector<1x32x64xf32> to vector<32x64xf32>
    %cst = arith.constant dense<0.000000e+00> : vector<8x64xf32>
    %3 = tpu.matmul %0, %2, %cst {dimension_numbers = #tpu.dot_dimension_numbers<[1], [0], [0], [1], [0, 0, 1, 1], [], []>} : vector<8x32xf32>, vector<32x64xf32>, vector<8x64xf32> -> vector<8x64xf32>
    %c0_4 = arith.constant 0 : index
    %c0_5 = arith.constant 0 : index
    %c0_6 = arith.constant 0 : index
    %4 = vector.load %arg3[%c0_4, %c0_5, %c0_6] : memref<3x1x64xf32, #tpu.memory_space<vmem>>, vector<1x1x64xf32>
    %5 = vector.shape_cast %4 : vector<1x1x64xf32> to vector<1x64xf32>
    %6 = vector.broadcast %5 : vector<1x64xf32> to vector<8x64xf32>
    %7 = arith.addf %3, %6 : vector<8x64xf32>
    %cst_7 = arith.constant 0.000000e+00 : f32
    %8 = vector.broadcast %cst_7 : f32 to vector<8x64xf32>
    %9 = arith.maximumf %7, %8 : vector<8x64xf32>
    %c0_8 = arith.constant 0 : index
    %c0_9 = arith.constant 0 : index
    %c0_10 = arith.constant 0 : index
    %10 = vector.load %arg4[%c0_8, %c0_9, %c0_10] : memref<3x64x16xf32, #tpu.memory_space<vmem>>, vector<1x64x16xf32>
    %11 = vector.shape_cast %10 : vector<1x64x16xf32> to vector<64x16xf32>
    %cst_11 = arith.constant dense<0.000000e+00> : vector<8x16xf32>
    %12 = tpu.matmul %9, %11, %cst_11 {dimension_numbers = #tpu.dot_dimension_numbers<[1], [0], [0], [1], [0, 0, 1, 1], [], []>} : vector<8x64xf32>, vector<64x16xf32>, vector<8x16xf32> -> vector<8x16xf32>
    %c0_12 = arith.constant 0 : index
    %c0_13 = arith.constant 0 : index
    %c0_14 = arith.constant 0 : index
    %13 = vector.load %arg5[%c0_12, %c0_13, %c0_14] : memref<3x1x16xf32, #tpu.memory_space<vmem>>, vector<1x1x16xf32>
    %14 = vector.shape_cast %13 : vector<1x1x16xf32> to vector<1x16xf32>
    %15 = vector.broadcast %14 : vector<1x16xf32> to vector<8x16xf32>
    %16 = arith.addf %12, %15 : vector<8x16xf32>
    %cst_15 = arith.constant 0.000000e+00 : f32
    %17 = vector.broadcast %cst_15 : f32 to vector<8x16xf32>
    %18 = arith.maximumf %16, %17 : vector<8x16xf32>
    %c1 = arith.constant 1 : index
    %c0_16 = arith.constant 0 : index
    %c0_17 = arith.constant 0 : index
    %19 = vector.load %arg2[%c1, %c0_16, %c0_17] : memref<3x32x64xf32, #tpu.memory_space<vmem>>, vector<1x16x64xf32>
    %20 = vector.shape_cast %19 : vector<1x16x64xf32> to vector<16x64xf32>
    %cst_18 = arith.constant dense<0.000000e+00> : vector<8x64xf32>
    %21 = tpu.matmul %18, %20, %cst_18 {dimension_numbers = #tpu.dot_dimension_numbers<[1], [0], [0], [1], [0, 0, 1, 1], [], []>} : vector<8x16xf32>, vector<16x64xf32>, vector<8x64xf32> -> vector<8x64xf32>
    %c1_19 = arith.constant 1 : index
    %c0_20 = arith.constant 0 : index
    %c0_21 = arith.constant 0 : index
    %22 = vector.load %arg3[%c1_19, %c0_20, %c0_21] : memref<3x1x64xf32, #tpu.memory_space<vmem>>, vector<1x1x64xf32>
    %23 = vector.shape_cast %22 : vector<1x1x64xf32> to vector<1x64xf32>
    %24 = vector.broadcast %23 : vector<1x64xf32> to vector<8x64xf32>
    %25 = arith.addf %21, %24 : vector<8x64xf32>
    %cst_22 = arith.constant 0.000000e+00 : f32
    %26 = vector.broadcast %cst_22 : f32 to vector<8x64xf32>
    %27 = arith.maximumf %25, %26 : vector<8x64xf32>
    %c1_23 = arith.constant 1 : index
    %c0_24 = arith.constant 0 : index
    %c0_25 = arith.constant 0 : index
    %28 = vector.load %arg4[%c1_23, %c0_24, %c0_25] : memref<3x64x16xf32, #tpu.memory_space<vmem>>, vector<1x64x16xf32>
    %29 = vector.shape_cast %28 : vector<1x64x16xf32> to vector<64x16xf32>
    %cst_26 = arith.constant dense<0.000000e+00> : vector<8x16xf32>
    %30 = tpu.matmul %27, %29, %cst_26 {dimension_numbers = #tpu.dot_dimension_numbers<[1], [0], [0], [1], [0, 0, 1, 1], [], []>} : vector<8x64xf32>, vector<64x16xf32>, vector<8x16xf32> -> vector<8x16xf32>
    %c1_27 = arith.constant 1 : index
    %c0_28 = arith.constant 0 : index
    %c0_29 = arith.constant 0 : index
    %31 = vector.load %arg5[%c1_27, %c0_28, %c0_29] : memref<3x1x16xf32, #tpu.memory_space<vmem>>, vector<1x1x16xf32>
    %32 = vector.shape_cast %31 : vector<1x1x16xf32> to vector<1x16xf32>
    %33 = vector.broadcast %32 : vector<1x16xf32> to vector<8x16xf32>
    %34 = arith.addf %30, %33 : vector<8x16xf32>
    %cst_30 = arith.constant 0.000000e+00 : f32
    %35 = vector.broadcast %cst_30 : f32 to vector<8x16xf32>
    %36 = arith.maximumf %34, %35 : vector<8x16xf32>
    %c2 = arith.constant 2 : index
    %c0_31 = arith.constant 0 : index
    %c0_32 = arith.constant 0 : index
    %37 = vector.load %arg2[%c2, %c0_31, %c0_32] : memref<3x32x64xf32, #tpu.memory_space<vmem>>, vector<1x16x64xf32>
    %38 = vector.shape_cast %37 : vector<1x16x64xf32> to vector<16x64xf32>
    %cst_33 = arith.constant dense<0.000000e+00> : vector<8x64xf32>
    %39 = tpu.matmul %36, %38, %cst_33 {dimension_numbers = #tpu.dot_dimension_numbers<[1], [0], [0], [1], [0, 0, 1, 1], [], []>} : vector<8x16xf32>, vector<16x64xf32>, vector<8x64xf32> -> vector<8x64xf32>
    %c2_34 = arith.constant 2 : index
    %c0_35 = arith.constant 0 : index
    %c0_36 = arith.constant 0 : index
    %40 = vector.load %arg3[%c2_34, %c0_35, %c0_36] : memref<3x1x64xf32, #tpu.memory_space<vmem>>, vector<1x1x64xf32>
    %41 = vector.shape_cast %40 : vector<1x1x64xf32> to vector<1x64xf32>
    %42 = vector.broadcast %41 : vector<1x64xf32> to vector<8x64xf32>
    %43 = arith.addf %39, %42 : vector<8x64xf32>
    %cst_37 = arith.constant 0.000000e+00 : f32
    %44 = vector.broadcast %cst_37 : f32 to vector<8x64xf32>
    %45 = arith.maximumf %43, %44 : vector<8x64xf32>
    %c2_38 = arith.constant 2 : index
    %c0_39 = arith.constant 0 : index
    %c0_40 = arith.constant 0 : index
    %46 = vector.load %arg4[%c2_38, %c0_39, %c0_40] : memref<3x64x16xf32, #tpu.memory_space<vmem>>, vector<1x64x16xf32>
    %47 = vector.shape_cast %46 : vector<1x64x16xf32> to vector<64x16xf32>
    %cst_41 = arith.constant dense<0.000000e+00> : vector<8x16xf32>
    %48 = tpu.matmul %45, %47, %cst_41 {dimension_numbers = #tpu.dot_dimension_numbers<[1], [0], [0], [1], [0, 0, 1, 1], [], []>} : vector<8x64xf32>, vector<64x16xf32>, vector<8x16xf32> -> vector<8x16xf32>
    %c2_42 = arith.constant 2 : index
    %c0_43 = arith.constant 0 : index
    %c0_44 = arith.constant 0 : index
    %49 = vector.load %arg5[%c2_42, %c0_43, %c0_44] : memref<3x1x16xf32, #tpu.memory_space<vmem>>, vector<1x1x16xf32>
    %50 = vector.shape_cast %49 : vector<1x1x16xf32> to vector<1x16xf32>
    %51 = vector.broadcast %50 : vector<1x16xf32> to vector<8x16xf32>
    %52 = arith.addf %48, %51 : vector<8x16xf32>
    %53 = vector.extract_strided_slice %52 {offsets = [0, 0], sizes = [8, 8], strides = [1, 1]} : vector<8x16xf32> to vector<8x8xf32>
    %c0_45 = arith.constant 0 : index
    %c0_46 = arith.constant 0 : index
    %54 = vector.load %arg6[%c0_45, %c0_46] : memref<8x8xf32, #tpu.memory_space<vmem>>, vector<8x8xf32>
    tpu.vector_store %arg6[%c0_45, %c0_46], %53 {strides = array<i32>} : memref<8x8xf32, #tpu.memory_space<vmem>>, vector<8x8xf32>,
    return
  }
  func.func @transform_0(%arg0: i32) -> (i32, i32) {
    %c0_i32 = arith.constant 0 : i32
    %c0_i32_0 = arith.constant 0 : i32
    return %arg0, %c0_i32 : i32, i32
  }
  func.func @transform_1(%arg0: i32) -> (i32, i32, i32) {
    %c0_i32 = arith.constant 0 : i32
    %c0_i32_0 = arith.constant 0 : i32
    %c0_i32_1 = arith.constant 0 : i32
    %c0_i32_2 = arith.constant 0 : i32
    return %c0_i32, %c0_i32_0, %c0_i32_1 : i32, i32, i32
  }
  func.func @transform_2(%arg0: i32) -> (i32, i32, i32) {
    %c0_i32 = arith.constant 0 : i32
    %c0_i32_0 = arith.constant 0 : i32
    %c0_i32_1 = arith.constant 0 : i32
    %c0_i32_2 = arith.constant 0 : i32
    return %c0_i32, %c0_i32_0, %c0_i32_1 : i32, i32, i32
  }
  func.func @transform_3(%arg0: i32) -> (i32, i32, i32) {
    %c0_i32 = arith.constant 0 : i32
    %c0_i32_0 = arith.constant 0 : i32
    %c0_i32_1 = arith.constant 0 : i32
    %c0_i32_2 = arith.constant 0 : i32
    return %c0_i32, %c0_i32_0, %c0_i32_1 : i32, i32, i32
  }
  func.func @transform_4(%arg0: i32) -> (i32, i32, i32) {
    %c0_i32 = arith.constant 0 : i32
    %c0_i32_0 = arith.constant 0 : i32
    %c0_i32_1 = arith.constant 0 : i32
    %c0_i32_2 = arith.constant 0 : i32
    return %c0_i32, %c0_i32_0, %c0_i32_1 : i32, i32, i32
  }
  func.func @transform_5(%arg0: i32) -> (i32, i32) {
    %c0_i32 = arith.constant 0 : i32
    %c0_i32_0 = arith.constant 0 : i32
    return %arg0, %c0_i32 : i32, i32
  }
}

</mosaic_0001>

<bundles_post_ra>
// kernel: _forward_padded.1
= control target key start
LH: loop header
LB: loop body
LE: loop exit
PB: predicated region body
PF: predicated region fallthrough
CT: control target
= control target key end

     0   :  { %v747_v1 = vmov 0.0   ;;  %vm748_vm0 = vmmov 0   ;;  %s949_s0 = inlined_call_operand.vmem [shape: f32[8,32], index: 0, kind: input, shape index: {}]   ;;  %s950_s1 = inlined_call_operand.vmem [shape: f32[3,32,64], index: 1, kind: input, shape index: {}]   ;;  %s951_s2 = inlined_call_operand.vmem [shape: f32[3,1,64], index: 2, kind: input, shape index: {}]   ;;  %s952_s3 = inlined_call_operand.vmem [shape: f32[3,64,16], index: 3, kind: input, shape index: {}]   ;;  %s953_s4 = inlined_call_operand.vmem [shape: f32[3,1,16], index: 4, kind: input, shape index: {}]   ;;  %s954_s5 = inlined_call_operand.hbm [shape: f32[8,8], index: 5, kind: output, shape index: {}]  }
   0x1   :  { %v25_v0 = vld [vmem:[%s950_s1 + $0x18] sm:$0xff]  ;;  %640 = vmatprep.subr.mxu0 %v747_v1  ;;  %v24_v2 = vld [vmem:[%s950_s1 + $0x10] sm:$0xff]  ;;  %648 = vmatprep.mubr.msk.f32.mxu0 %vm748_vm0, %v747_v1  ;;  %v23_v5 = vld [vmem:[%s950_s1 + $0x8] sm:$0xff] }
   0x2   :  { %v115_v3 = vld [vmem:[%s952_s3 + $0x38] sm:$0xff]  ;;  %641 = vmatpush3.msra.mxu0 %v25_v0  ;;  %651 = vmatprep.subr.mxu1 %v747_v1  ;;  %v114_v4 = vld [vmem:[%s952_s3 + $0x30] sm:$0xff] }
   0x3   :  { %642 = vmatprep.subr.mxu0 %v747_v1  ;;  %652 = vmatpush3.msra.mxu1 %v115_v3 }
   0x4   :  { %10 = vsyncpa [#allocation3], 0  ;;  %643 = vmatpush3.msra.mxu0 %v24_v2  ;;  %653 = vmatprep.subr.mxu1 %v747_v1  ;;  %v113_v6 = vld [vmem:[%s952_s3 + $0x28] sm:$0xff]  ;;  %v22_v7 = vld [vmem:[%s950_s1] sm:$0xff]  ;;  %vm33_vm1 = vcmask 261120   ;;  %vm123_vm2 = vcmask 523264  }
   0x5   :  { %644 = vmatprep.subr.mxu0 %v747_v1  ;;  %654 = vmatpush3.msra.mxu1 %v114_v4  ;;  %v21_v8 = vld [vmem:[%s949_s0] sm:$0xff]  ;;  %v111_v10 = vld [vmem:[%s952_s3 + $0x18] sm:$0xff]  ;;  %v110_v11 = vld [vmem:[%s952_s3 + $0x10] sm:$0xff]  ;;  %vm209_vm3 = vcmask 130048   ;;  %s749_s17 = smov [#allocation2]   ;;  %vm550_vm4 = vcmask 64512  }
   0x6   :  { %645 = vmatpush3.msra.mxu0 %v23_v5  ;;  %655 = vmatprep.subr.mxu1 %v747_v1  ;;  %v112_v9 = vld [vmem:[%s952_s3 + $0x20] sm:$0xff]  ;;  %v109_v12 = vld [vmem:[%s952_s3 + $0x8] sm:$0xff]  ;;  %v582_v26 = vld [vmem:[%s952_s3 + $0x78] sm:$0xff]  ;;  %s558_s18 = sshll.u32 %s749_s17, 4  ;;  %s559_s18 = int_to_ptr.vmem [resolvable:$true] %s558_s18 }
   0x7   :  { %646 = vmatprep.subr.mxu0 %v747_v1  ;;  %656 = vmatpush3.msra.mxu1 %v113_v6  ;;  %v108_v13 = vld [vmem:[%s952_s3] sm:$0xff]  ;;  %v571_v19 = vld [vmem:[%s950_s1 + $0x28] sm:$0xff]  ;;  %v581_v27 = vld [vmem:[%s952_s3 + $0x70] sm:$0xff]  ;;  %p730_p1 = scmp.lt.s32.totalorder %s559_s18, %s559_s18 }
   0x8   :  { %647 = vmatpush3.msra.mxu0 %v22_v7  ;;  %657 = vmatprep.subr.mxu1 %v747_v1  ;;  %v566_v14 = vld [vmem:[%s951_s2] ss:$0 sm:$0xff]  ;;  %v580_v28 = vld [vmem:[%s952_s3 + $0x68] sm:$0xff]  ;;  %v578_v30 = vld [vmem:[%s952_s3 + $0x58] sm:$0xff] }
   0x9   :  { %649 = vmatmul.mubr.msk.f32.vlgmr.msra.gmra.mxu0 %vm33_vm1, %v21_v8  ;;  %658 = vmatpush3.msra.mxu1 %v112_v9  ;;  %v570_v20 = vld [vmem:[%s950_s1 + $0x20] sm:$0xff]  ;;  %v577_v31 = vld [vmem:[%s952_s3 + $0x50] sm:$0xff]  ;;  %v576_v32 = vld [vmem:[%s952_s3 + $0x48] sm:$0xff] }
   0xa   :  { %659 = vmatprep.subr.mxu1 %v747_v1  ;;  %667 = vmatprep.mubr.msk.f32.mxu1 %vm748_vm0, %v747_v1  ;;  %v568_v21 = vld [vmem:[%s953_s4] ss:$0 sm:$0xff]  ;;  %v573_v34 = vld [vmem:[%s951_s2 + $0x1] ss:$0 sm:$0xff]  ;;  %v587_v39 = vld [vmem:[%s950_s1 + $0x48] sm:$0xff] }
   0xb   :  { %660 = vmatpush3.msra.mxu1 %v111_v10  ;;  %670 = vmatprep.subr.mxu0 %v747_v1  ;;  %v579_v29 = vld [vmem:[%s952_s3 + $0x60] sm:$0xff]  ;;  %v598_v41 = vld [vmem:[%s952_s3 + $0xb8] sm:$0xff]  ;;  %v597_v42 = vld [vmem:[%s952_s3 + $0xb0] sm:$0xff] }
   0xc   :  { %661 = vmatprep.subr.mxu1 %v747_v1  ;;  %674 = vmatprep.mubr.msk.f32.mxu0 %vm748_vm0, %v747_v1  ;;  %v575_v33 = vld [vmem:[%s952_s3 + $0x40] sm:$0xff]  ;;  %v596_v43 = vld [vmem:[%s952_s3 + $0xa8] sm:$0xff]  ;;  %v594_v45 = vld [vmem:[%s952_s3 + $0x98] sm:$0xff] }
   0xd   :  { %662 = vmatpush3.msra.mxu1 %v110_v11  ;;  %671 = vmatpush3.msra.mxu0 %v571_v19  ;;  %v586_v40 = vld [vmem:[%s950_s1 + $0x40] sm:$0xff]  ;;  %v593_v51 = vld [vmem:[%s952_s3 + $0x90] sm:$0xff]  ;;  %v592_v52 = vld [vmem:[%s952_s3 + $0x88] sm:$0xff] }
   0xe   :  { %663 = vmatprep.subr.mxu1 %v747_v1  ;;  %672 = vmatprep.subr.mxu0 %v747_v1  ;;  %v595_v44 = vld [vmem:[%s952_s3 + $0xa0] sm:$0xff] }
   0xf   :  { %664 = vmatpush3.msra.mxu1 %v109_v12  ;;  %673 = vmatpush3.msra.mxu0 %v570_v20  ;;  %v584_v46 = vld [vmem:[%s953_s4 + $0x1] ss:$0 sm:$0xff]  ;;  %v589_v54 = vld [vmem:[%s951_s2 + $0x2] ss:$0 sm:$0xff] }
  0x10   :  { %665 = vmatprep.subr.mxu1 %v747_v1  ;;  %677 = vmatprep.subr.mxu0 %v747_v1  ;;  %v591_v53 = vld [vmem:[%s952_s3 + $0x80] sm:$0xff]  ;;  %s725_s3 = scalar_lea.vmem %s559_s18, 128 }
  0x11   :  { %666 = vmatpush3.msra.mxu1 %v108_v13  ;;  %v600_v59 = vld [vmem:[%s953_s4 + $0x2] ss:$0 sm:$0xff]  ;;  %p726_p0 = scmp.ne.s32.totalorder %s559_s18, %s725_s3  ;;  %p731_p2 = scmp.lt.s32.totalorder %s725_s3, %s725_s3 }
  0x12   :  { %703 = vmatprep.subr.mxu1 %v747_v1 }
  0x13   :  { %p732_p3 = por %p731_p2, %p730_p1 }
  0x15   :  { %p733_p4 = pnand %p732_p3, %p726_p0 }
  0xc9   :  { %v103_v15 = vpop.f32.mrf.mxu0 }
  0xca   :  { %v104_v16 = vadd.f32 %v566_v14, %v103_v15 }
  0xcb   :  { %v650_v17 = vpop.f32.mrf.mxu0 }
  0xcc   :  { %v107_v18 = vmax.f32 %v104_v16, 0.0 }
  0xce   :  { %668 = vmatmul.mubr.msk.f32.vlgmr.msra.gmra.mxu1 %vm123_vm2, %v107_v18 }
  0xcf   :  { %719 = vmatprep.mubr.msk.f32.mxu1 %vm748_vm0, %v747_v1  ;;  %704 = vmatpush3.msra.mxu1 %v598_v41 }
  0xd0   :  { %705 = vmatprep.subr.mxu1 %v747_v1 }
  0xd1   :  { %706 = vmatpush3.msra.mxu1 %v597_v42 }
  0xd2   :  { %707 = vmatprep.subr.mxu1 %v747_v1 }
  0xd3   :  { %708 = vmatpush3.msra.mxu1 %v596_v43 }
  0xd4   :  { %709 = vmatprep.subr.mxu1 %v747_v1 }
  0xd5   :  { %710 = vmatpush3.msra.mxu1 %v595_v44 }
  0xd6   :  { %711 = vmatprep.subr.mxu1 %v747_v1 }
  0xd7   :  { %712 = vmatpush3.msra.mxu1 %v594_v45 }
  0xd8   :  { %713 = vmatprep.subr.mxu1 %v747_v1 }
  0xd9   :  { %714 = vmatpush3.msra.mxu1 %v593_v51 }
  0xda   :  { %715 = vmatprep.subr.mxu1 %v747_v1 }
  0xdb   :  { %716 = vmatpush3.msra.mxu1 %v592_v52 }
  0xdc   :  { %717 = vmatprep.subr.mxu1 %v747_v1 }
  0xdd   :  { %718 = vmatpush3.msra.mxu1 %v591_v53 }
 0x18e   :  { %v193_v22 = vpop.f32.mrf.mxu1 }
 0x18f   :  { %v194_v23 = vadd.f32 %v568_v21, %v193_v22 }
 0x190   :  { %v669_v24 = vpop.f32.mrf.mxu1 }
 0x191   :  { %v197_v25 = vmax.f32 %v194_v23, 0.0 }
 0x193   :  { %675 = vmatmul.mubr.msk.f32.vlgmr.msra.gmra.mxu0 %vm209_vm3, %v197_v25 }
 0x194   :  { %678 = vmatpush3.msra.mxu0 %v582_v26  ;;  %693 = vmatprep.mubr.msk.f32.mxu0 %vm748_vm0, %v747_v1 }
 0x195   :  { %679 = vmatprep.subr.mxu0 %v747_v1 }
 0x196   :  { %680 = vmatpush3.msra.mxu0 %v581_v27 }
 0x197   :  { %681 = vmatprep.subr.mxu0 %v747_v1 }
 0x198   :  { %682 = vmatpush3.msra.mxu0 %v580_v28 }
 0x199   :  { %683 = vmatprep.subr.mxu0 %v747_v1 }
 0x19a   :  { %684 = vmatpush3.msra.mxu0 %v579_v29 }
 0x19b   :  { %685 = vmatprep.subr.mxu0 %v747_v1 }
 0x19c   :  { %686 = vmatpush3.msra.mxu0 %v578_v30 }
 0x19d   :  { %687 = vmatprep.subr.mxu0 %v747_v1 }
 0x19e   :  { %688 = vmatpush3.msra.mxu0 %v577_v31 }
 0x19f   :  { %689 = vmatprep.subr.mxu0 %v747_v1 }
 0x1a0   :  { %690 = vmatpush3.msra.mxu0 %v576_v32 }
 0x1a1   :  { %691 = vmatprep.subr.mxu0 %v747_v1 }
 0x1a2   :  { %692 = vmatpush3.msra.mxu0 %v575_v33 }
 0x1a3   :  { %696 = vmatprep.subr.mxu0 %v747_v1 }
 0x253   :  { %v279_v35 = vpop.f32.mrf.mxu0 }
 0x254   :  { %v280_v36 = vadd.f32 %v573_v34, %v279_v35 }
 0x255   :  { %v676_v37 = vpop.f32.mrf.mxu0 }
 0x256   :  { %v283_v38 = vmax.f32 %v280_v36, 0.0 }
 0x258   :  { %694 = vmatmul.mubr.msk.f32.vlgmr.msra.gmra.mxu0 %vm123_vm2, %v283_v38 }
 0x259   :  { %700 = vmatprep.mubr.msk.f32.mxu0 %vm748_vm0, %v747_v1  ;;  %697 = vmatpush3.msra.mxu0 %v587_v39 }
 0x25a   :  { %698 = vmatprep.subr.mxu0 %v747_v1 }
 0x25b   :  { %699 = vmatpush3.msra.mxu0 %v586_v40 }
 0x318   :  { %v370_v47 = vpop.f32.mrf.mxu0 }
 0x319   :  { %v371_v48 = vadd.f32 %v584_v46, %v370_v47 }
 0x31a   :  { %v695_v49 = vpop.f32.mrf.mxu0 }
 0x31b   :  { %v374_v50 = vmax.f32 %v371_v48, 0.0 }
 0x31d   :  { %701 = vmatmul.mubr.msk.f32.vlgmr.msra.gmra.mxu0 %vm209_vm3, %v374_v50 }
 0x3dd   :  { %v455_v55 = vpop.f32.mrf.mxu0 }
 0x3de   :  { %v456_v56 = vadd.f32 %v589_v54, %v455_v55 }
 0x3df   :  { %v702_v57 = vpop.f32.mrf.mxu0 }
 0x3e0   :  { %v459_v58 = vmax.f32 %v456_v56, 0.0 }
 0x3e2   :  { %720 = vmatmul.mubr.msk.f32.vlgmr.msra.gmra.mxu1 %vm123_vm2, %v459_v58 }
 0x4a2   :  { %v546_v60 = vpop.f32.mrf.mxu1 }
 0x4a3   :  { %v547_v61 = vadd.f32 %v600_v59, %v546_v60 }
 0x4a4   :  { %v721_v62 = vpop.f32.mrf.mxu1 }
 0x4a5   :  { %551 = vst.msk [vmem:[#allocation2] sm:$0xff] %vm550_vm4, %v547_v61 }
 0x4a6   :  { %736 = shalt.err (!%p733_p4)
}
 0x4a7   :  { %561 = dma.vmem_to_hbm [thread:$0]  %s559_s18, 128, %s954_s5, [#allocation3]  }
 0x4a8   :  { %745 = dma.done.wait [#allocation3], 128  }
 0x4a9   :  { %746 = vsyncadd [#allocation3], 4294967168 }
 0x4aa   :  { %565 = vsyncpa [#allocation3], 1 }

</bundles_post_ra>
